<compile_context>
chip_gen: v6e
topology: v6e:2x2x1
jax: 0.10.0
libtpu: 0.0.40
codegen_flags: <defaults>
</compile_context>

<pallas_src>
import functools

import jax
import jax.numpy as jnp
from jax.experimental import pallas as pl
from jax.experimental.pallas import tpu as pltpu


def _round_up(n, m):
    return (n + m - 1) // m * m


def _pad2d(a, rows, cols):
    """Zero-pad a 2-D array up to (rows, cols); no-op if already that shape."""
    pr, pc = rows - a.shape[0], cols - a.shape[1]
    if pr == 0 and pc == 0:
        return a
    return jnp.pad(a, ((0, pr), (0, pc)))


def autoencoder_kernel(x_ref, we_ref, be_ref, wd_ref, bd_ref, o_ref):
    # x_ref:  (tile_b, Fp)  batch tile (compute dtype)
    # we_ref: (Fp, Ep)      encoder weight, pre-transposed (compute dtype)
    # be_ref: (1, Ep)       encoder bias (f32)
    # wd_ref: (Ep, Fp)      decoder weight, pre-transposed (compute dtype)
    # bd_ref: (1, Fp)       decoder bias (f32)
    # o_ref:  (tile_b, Fp)
    x = x_ref[...]
    enc = jnp.dot(x, we_ref[...], preferred_element_type=jnp.float32) + be_ref[...]
    # Feed the decoder MXU in the weight dtype (no-op for f32, halves MXU input
    # width for bf16); accumulation stays f32 via preferred_element_type.
    enc = enc.astype(wd_ref.dtype)
    rec = jnp.dot(enc, wd_ref[...], preferred_element_type=jnp.float32) + bd_ref[...]
    o_ref[...] = rec.astype(o_ref.dtype)


def autoencoder_forward(x, w_enc, b_enc, w_dec, b_dec, *,
                        tile_b=512, compute_dtype=None):
    """
    x:     (B, F)
    w_enc: (E, F) torch nn.Linear layout;  b_enc: (E,)
    w_dec: (F, E) torch nn.Linear layout;  b_dec: (F,)
    Returns the reconstruction of shape (B, F) in x's dtype.
    """
    B, F = x.shape
    E = w_enc.shape[0]
    out_dtype = x.dtype
    cdt = jnp.dtype(compute_dtype) if compute_dtype is not None else jnp.dtype(x.dtype)

    # Lane-dense padding (multiples of 128) for F and E.
    Fp = _round_up(F, 128)
    Ep = _round_up(E, 128)

    # Sublane granularity: 8 rows for 32-bit, 16 for bf16.
    sub = 16 if cdt == jnp.dtype(jnp.bfloat16) else 8
    tile_b = max(sub, _round_up(min(int(tile_b), _round_up(B, sub)), sub))
    Bp = _round_up(B, tile_b)

    # Pre-transpose + zero-pad parameters and inputs.  Zero padding is exact:
    # padded encoder columns produce zero encodings, padded decoder columns are
    # sliced off below.  (At scale, store weights pre-transposed/padded, or jit
    # this wrapper so XLA hoists these copies out of the hot path.)
    we_t = _pad2d(w_enc.T.astype(cdt), Fp, Ep)
    wd_t = _pad2d(w_dec.T.astype(cdt), Ep, Fp)
    be = _pad2d(b_enc.astype(jnp.float32)[None, :], 1, Ep)
    bd = _pad2d(b_dec.astype(jnp.float32)[None, :], 1, Fp)
    xp = _pad2d(x.astype(cdt), Bp, Fp)

    grid = (Bp // tile_b,)

    itm = cdt.itemsize
    cost = pl.CostEstimate(
        flops=2 * 2 * Bp * Fp * Ep,                              # two matmuls
        transcendentals=0,
        bytes_accessed=(Bp * Fp * itm                            # x in
                        + Bp * Fp * jnp.dtype(out_dtype).itemsize  # out
                        + 2 * Fp * Ep * itm                      # both weights
                        + 4 * (Ep + Fp)),                        # biases (f32)
    )

    # TODO(synk): for very large F*E (weights > ~16 MiB) add a second grid axis
    # over F so only an (Ep, tile_n) slice of wd_t is VMEM-resident (v7x 64 MiB).
    out = pl.pallas_call(
        autoencoder_kernel,
        out_shape=jax.ShapeDtypeStruct((Bp, Fp), out_dtype),
        grid_spec=pltpu.PrefetchScalarGridSpec(
            num_scalar_prefetch=0,
            grid=grid,
            in_specs=[
                pl.BlockSpec((tile_b, Fp), lambda i: (i, 0)),  # x tile (streams)
                pl.BlockSpec((Fp, Ep), lambda i: (0, 0)),      # encoder weight (grid-invariant)
                pl.BlockSpec((1, Ep), lambda i: (0, 0)),       # encoder bias
                pl.BlockSpec((Ep, Fp), lambda i: (0, 0)),      # decoder weight (grid-invariant)
                pl.BlockSpec((1, Fp), lambda i: (0, 0)),       # decoder bias
            ],
            out_specs=pl.BlockSpec((tile_b, Fp), lambda i: (i, 0)),
        ),
        compiler_params=pltpu.CompilerParams(
            # Batch axis is embarrassingly parallel -> megacore sharding on v7x.
            dimension_semantics=("parallel",),
            vmem_limit_bytes=64 * 1024 * 1024,
        ),
        cost_estimate=cost,
    )(xp, we_t, be, wd_t, bd)

    return out[:B, :F]


def init_autoencoder_params(key, input_features, encoding_dim, dtype=jnp.float32):
    """Deterministic init matching torch nn.Linear default U[-1/sqrt(fan_in), +1/sqrt(fan_in)]."""
    k1, k2, k3, k4 = jax.random.split(key, 4)
    bound_e = 1.0 / jnp.sqrt(jnp.asarray(input_features, jnp.float32))
    bound_d = 1.0 / jnp.sqrt(jnp.asarray(encoding_dim, jnp.float32))
    w_enc = jax.random.uniform(k1, (encoding_dim, input_features), dtype, -bound_e, bound_e)
    b_enc = jax.random.uniform(k2, (encoding_dim,), dtype, -bound_e, bound_e)
    w_dec = jax.random.uniform(k3, (input_features, encoding_dim), dtype, -bound_d, bound_d)
    b_dec = jax.random.uniform(k4, (input_features,), dtype, -bound_d, bound_d)
    return w_enc, b_enc, w_dec, b_dec


def _reference(x, w_enc, b_enc, w_dec, b_dec):
    p = jax.lax.Precision.HIGHEST
    enc = jnp.dot(x, w_enc.T, precision=p) + b_enc
    return jnp.dot(enc, w_dec.T, precision=p) + b_dec


if __name__ == "__main__":
    key = jax.random.PRNGKey(0)

    # --- Case 1: small shapes matching the module demo (B=8, F=64, E=32), f32. ---
    B, F, E = 8, 64, 32
    kx, kp = jax.random.split(key)
    x = jax.random.normal(kx, (B, F), jnp.float32)
    w_enc, b_enc, w_dec, b_dec = init_autoencoder_params(kp, F, E)

    out = jax.block_until_ready(autoencoder_forward(x, w_enc, b_enc, w_dec, b_dec))
    ref = _reference(x, w_enc, b_enc, w_dec, b_dec)
    assert out.shape == (B, F)
    assert jnp.allclose(out, ref, atol=1e-4, rtol=1e-4)

    # --- Case 2: tiled / pipelined path (grid = (4,)), jitted wrapper, f32. ---
    B2, F2, E2 = 1024, 256, 128
    kx2, kp2 = jax.random.split(kp)
    x2 = jax.random.normal(kx2, (B2, F2), jnp.float32)
    w_enc2, b_enc2, w_dec2, b_dec2 = init_autoencoder_params(kp2, F2, E2)

    fwd_f32 = jax.jit(functools.partial(autoencoder_forward, tile_b=256))
    out2 = jax.block_until_ready(fwd_f32(x2, w_enc2, b_enc2, w_dec2, b_dec2))
    ref2 = _reference(x2, w_enc2, b_enc2, w_dec2, b_dec2)
    assert out2.shape == (B2, F2)
    assert jnp.allclose(out2, ref2, atol=1e-3, rtol=1e-3)

    # --- Case 3: bf16 compute (halved HBM traffic, native MXU), f32 accumulate. ---
    fwd_bf16 = jax.jit(functools.partial(autoencoder_forward, tile_b=256,
                                         compute_dtype=jnp.bfloat16))
    out3 = jax.block_until_ready(fwd_bf16(x2, w_enc2, b_enc2, w_dec2, b_dec2))
    assert out3.shape == (B2, F2)
    assert jnp.allclose(out3, ref2, atol=1e-1, rtol=1e-1)

    print("KERNEL_OK")
</pallas_src>

<mosaic_0001>
module attributes {stable_mosaic.version = 11 : i64} {
  func.func @autoencoder_kernel(%arg0: i32, %arg1: memref<8x128xf32, #tpu.memory_space<vmem>>, %arg2: memref<128x128xf32, #tpu.memory_space<vmem>>, %arg3: memref<1x128xf32, #tpu.memory_space<vmem>>, %arg4: memref<128x128xf32, #tpu.memory_space<vmem>>, %arg5: memref<1x128xf32, #tpu.memory_space<vmem>>, %arg6: memref<8x128xf32, #tpu.memory_space<vmem>>) attributes {dimension_semantics = [#tpu.dimension_semantics<parallel>], iteration_bounds = array<i64: 1>, scalar_prefetch = 0 : i64, scratch_operands = 0 : i64, tpu.core_type = #tpu.core_type<tc>, window_params = [{transform_indices = @transform_0, window_bounds = array<i64: 8, 128>}, {pipeline_mode = #tpu.pipeline_mode<synchronous>, transform_indices = @transform_1, window_bounds = array<i64: 128, 128>}, {pipeline_mode = #tpu.pipeline_mode<synchronous>, transform_indices = @transform_2, window_bounds = array<i64: 1, 128>}, {pipeline_mode = #tpu.pipeline_mode<synchronous>, transform_indices = @transform_3, window_bounds = array<i64: 128, 128>}, {pipeline_mode = #tpu.pipeline_mode<synchronous>, transform_indices = @transform_4, window_bounds = array<i64: 1, 128>}, {transform_indices = @transform_5, window_bounds = array<i64: 8, 128>}]} {
    %c0 = arith.constant 0 : index
    %c0_0 = arith.constant 0 : index
    %0 = vector.load %arg1[%c0, %c0_0] : memref<8x128xf32, #tpu.memory_space<vmem>>, vector<8x128xf32>
    %c0_1 = arith.constant 0 : index
    %c0_2 = arith.constant 0 : index
    %1 = vector.load %arg2[%c0_1, %c0_2] : memref<128x128xf32, #tpu.memory_space<vmem>>, vector<128x128xf32>
    %cst = arith.constant dense<0.000000e+00> : vector<8x128xf32>
    %2 = tpu.matmul %0, %1, %cst {dimension_numbers = #tpu.dot_dimension_numbers<[1], [0], [0], [1], [0, 0, 1, 1], [], []>} : vector<8x128xf32>, vector<128x128xf32>, vector<8x128xf32> -> vector<8x128xf32>
    %c0_3 = arith.constant 0 : index
    %c0_4 = arith.constant 0 : index
    %3 = vector.load %arg3[%c0_3, %c0_4] : memref<1x128xf32, #tpu.memory_space<vmem>>, vector<1x128xf32>
    %4 = vector.broadcast %3 : vector<1x128xf32> to vector<8x128xf32>
    %5 = arith.addf %2, %4 : vector<8x128xf32>
    %c0_5 = arith.constant 0 : index
    %c0_6 = arith.constant 0 : index
    %6 = vector.load %arg4[%c0_5, %c0_6] : memref<128x128xf32, #tpu.memory_space<vmem>>, vector<128x128xf32>
    %cst_7 = arith.constant dense<0.000000e+00> : vector<8x128xf32>
    %7 = tpu.matmul %5, %6, %cst_7 {dimension_numbers = #tpu.dot_dimension_numbers<[1], [0], [0], [1], [0, 0, 1, 1], [], []>} : vector<8x128xf32>, vector<128x128xf32>, vector<8x128xf32> -> vector<8x128xf32>
    %c0_8 = arith.constant 0 : index
    %c0_9 = arith.constant 0 : index
    %8 = vector.load %arg5[%c0_8, %c0_9] : memref<1x128xf32, #tpu.memory_space<vmem>>, vector<1x128xf32>
    %9 = vector.broadcast %8 : vector<1x128xf32> to vector<8x128xf32>
    %10 = arith.addf %7, %9 : vector<8x128xf32>
    %c0_10 = arith.constant 0 : index
    %c0_11 = arith.constant 0 : index
    %11 = vector.load %arg6[%c0_10, %c0_11] : memref<8x128xf32, #tpu.memory_space<vmem>>, vector<8x128xf32>
    tpu.vector_store %arg6[%c0_10, %c0_11], %10 {strides = array<i32>} : memref<8x128xf32, #tpu.memory_space<vmem>>, vector<8x128xf32>,
    return
  }
  func.func @transform_0(%arg0: i32) -> (i32, i32) {
    %c0_i32 = arith.constant 0 : i32
    %c0_i32_0 = arith.constant 0 : i32
    return %arg0, %c0_i32 : i32, i32
  }
  func.func @transform_1(%arg0: i32) -> (i32, i32) {
    %c0_i32 = arith.constant 0 : i32
    %c0_i32_0 = arith.constant 0 : i32
    %c0_i32_1 = arith.constant 0 : i32
    return %c0_i32, %c0_i32_0 : i32, i32
  }
  func.func @transform_2(%arg0: i32) -> (i32, i32) {
    %c0_i32 = arith.constant 0 : i32
    %c0_i32_0 = arith.constant 0 : i32
    %c0_i32_1 = arith.constant 0 : i32
    return %c0_i32, %c0_i32_0 : i32, i32
  }
  func.func @transform_3(%arg0: i32) -> (i32, i32) {
    %c0_i32 = arith.constant 0 : i32
    %c0_i32_0 = arith.constant 0 : i32
    %c0_i32_1 = arith.constant 0 : i32
    return %c0_i32, %c0_i32_0 : i32, i32
  }
  func.func @transform_4(%arg0: i32) -> (i32, i32) {
    %c0_i32 = arith.constant 0 : i32
    %c0_i32_0 = arith.constant 0 : i32
    %c0_i32_1 = arith.constant 0 : i32
    return %c0_i32, %c0_i32_0 : i32, i32
  }
  func.func @transform_5(%arg0: i32) -> (i32, i32) {
    %c0_i32 = arith.constant 0 : i32
    %c0_i32_0 = arith.constant 0 : i32
    return %arg0, %c0_i32 : i32, i32
  }
}

</mosaic_0001>

<bundles_post_ra>
// kernel: tpu_custom_call.1
= control target key start
LH: loop header
LB: loop body
LE: loop exit
PB: predicated region body
PF: predicated region fallthrough
CT: control target
= control target key end

     0   :  { %10 = vsyncpa [#allocation3], 0  ;;  %s554_s0 = inlined_call_operand.hbm [shape: f32[8,128], index: 0, kind: input, shape index: {}]   ;;  %s555_s1 = inlined_call_operand.hbm [shape: f32[128,128], index: 1, kind: input, shape index: {}]   ;;  %s556_s2 = inlined_call_operand.vmem [shape: f32[1,128], index: 2, kind: input, shape index: {}]   ;;  %s557_s3 = inlined_call_operand.hbm [shape: f32[128,128], index: 3, kind: input, shape index: {}]   ;;  %s558_s4 = inlined_call_operand.vmem [shape: f32[1,128], index: 4, kind: input, shape index: {}]   ;;  %s559_s5 = inlined_call_operand.hbm [shape: f32[8,128], index: 5, kind: output, shape index: {}]  }
   0x1   :  { %11 = vsyncpa [#allocation6], 0 }
   0x2   :  { %12 = vsyncpa [#allocation4], 0  ;;  %s464_s18 = smov [#allocation5]  }
   0x3   :  { %s28_s19 = sshll.u32 %s464_s18, 4  ;;  %s29_s19 = int_to_ptr.vmem [resolvable:$true] %s28_s19 }
   0x4   :  { %s386_s20 = scalar_lea.vmem %s29_s19, 2048  ;;  %p391_p1 = scmp.lt.s32.totalorder %s29_s19, %s29_s19 }
   0x5   :  { %p387_p0 = scmp.ne.s32.totalorder %s29_s19, %s386_s20  ;;  %p392_p2 = scmp.lt.s32.totalorder %s386_s20, %s386_s20 }
   0x7   :  { %p393_p3 = por %p392_p2, %p391_p1 }
   0x9   :  { %p394_p4 = pnand %p393_p3, %p387_p0 }
   0xb   :  { %397 = shalt.err (!%p394_p4)
}
   0xc   :  { %s465_s21 = smov 128   ;;  %s466_s22 = smov 8  }
   0xd   :  { %34 = dma.hbm_to_vmem [thread:$0]  %s555_s1, 2048, %s29_s19, [#allocation6], %s465_s21, %s465_s21, %s466_s22  }
   0xe   :  { %s467_s25 = smov [#allocation2]   ;;  %s468_s27 = smov [#allocation7]  }
   0xf   :  { %s19_s26 = sshll.u32 %s467_s25, 4  ;;  %s42_s28 = sshll.u32 %s468_s27, 4  ;;  %s20_s26 = int_to_ptr.vmem [resolvable:$true] %s19_s26  ;;  %s43_s28 = int_to_ptr.vmem [resolvable:$true] %s42_s28 }
  0x10   :  { %s406_s29 = scalar_lea.vmem %s20_s26, 128  ;;  %p411_p6 = scmp.lt.s32.totalorder %s20_s26, %s20_s26 }
  0x11   :  { %p407_p5 = scmp.ne.s32.totalorder %s20_s26, %s406_s29  ;;  %p412_p7 = scmp.lt.s32.totalorder %s406_s29, %s406_s29 }
  0x13   :  { %p413_p8 = por %p412_p7, %p411_p6 }
  0x15   :  { %p414_p9 = pnand %p413_p8, %p407_p5 }
  0x17   :  { %417 = shalt.err (!%p414_p9)
}
  0x18   :  { %22 = dma.hbm_to_vmem [thread:$0]  %s554_s0, 128, %s20_s26, [#allocation3]  }
  0x19   :  { %s426_s7 = scalar_lea.vmem %s43_s28, 2048  ;;  %p431_p11 = scmp.lt.s32.totalorder %s43_s28, %s43_s28 }
  0x1a   :  { %p427_p10 = scmp.ne.s32.totalorder %s43_s28, %s426_s7  ;;  %p432_p12 = scmp.lt.s32.totalorder %s426_s7, %s426_s7 }
  0x1c   :  { %p433_p13 = por %p432_p12, %p431_p11 }
  0x1e   :  { %p434_p0 = pnand %p433_p13, %p427_p10 }
  0x20   :  { %437 = shalt.err (!%p434_p0)
}
  0x21   :  { %48 = dma.hbm_to_vmem [thread:$0]  %s557_s3, 2048, %s43_s28, [#allocation6], %s465_s21, %s465_s21, %s466_s22  }
  0x22   :  { %458 = dma.done.wait [#allocation3], 128  }
  0x23   :  { %459 = vsyncadd [#allocation3], 4294967168 }
  0x24   :  { %460 = dma.done.wait [#allocation6], 4096  }
  0x25   :  { %461 = vsyncadd [#allocation6], 4294963200  ;;  %v469_v0 = vmov 0.0   ;;  %vm470_vm0 = vmmov 0   ;;  %v76_v1 = vld [vmem:[#allocation5 + $0x78] sm:$0xff]  ;;  %v75_v2 = vld [vmem:[#allocation5 + $0x70] sm:$0xff] }
  0x26   :  { %300 = vmatprep.subr.mxu0 %v469_v0  ;;  %332 = vmatprep.mubr.msk.f32.mxu0 %vm470_vm0, %v469_v0  ;;  %v74_v3 = vld [vmem:[#allocation5 + $0x68] sm:$0xff]  ;;  %v73_v4 = vld [vmem:[#allocation5 + $0x60] sm:$0xff]  ;;  %v169_v5 = vld [vmem:[#allocation7 + $0x78] sm:$0xff]  ;;  %s471_s11 = smov [#allocation8]  }
  0x27   :  { %335 = vmatprep.subr.mxu1 %v469_v0  ;;  %367 = vmatprep.mubr.msk.f32.mxu1 %vm470_vm0, %v469_v0  ;;  %v72_v6 = vld [vmem:[#allocation5 + $0x58] sm:$0xff]  ;;  %v168_v7 = vld [vmem:[#allocation7 + $0x70] sm:$0xff]  ;;  %v167_v8 = vld [vmem:[#allocation7 + $0x68] sm:$0xff]  ;;  %s254_s12 = sshll.u32 %s471_s11, 4  ;;  %s255_s12 = int_to_ptr.vmem [resolvable:$true] %s254_s12 }
  0x28   :  { %301 = vmatpush3.msra.mxu0 %v76_v1  ;;  %336 = vmatpush3.msra.mxu1 %v169_v5  ;;  %v71_v9 = vld [vmem:[#allocation5 + $0x50] sm:$0xff]  ;;  %v166_v10 = vld [vmem:[#allocation7 + $0x60] sm:$0xff]  ;;  %v70_v11 = vld [vmem:[#allocation5 + $0x48] sm:$0xff]  ;;  %s438_s13 = scalar_lea.vmem %s255_s12, 128  ;;  %p443_p2 = scmp.lt.s32.totalorder %s255_s12, %s255_s12 }
  0x29   :  { %302 = vmatprep.subr.mxu0 %v469_v0  ;;  %337 = vmatprep.subr.mxu1 %v469_v0  ;;  %v165_v12 = vld [vmem:[#allocation7 + $0x58] sm:$0xff]  ;;  %v69_v13 = vld [vmem:[#allocation5 + $0x40] sm:$0xff]  ;;  %v164_v14 = vld [vmem:[#allocation7 + $0x50] sm:$0xff]  ;;  %p439_p1 = scmp.ne.s32.totalorder %s255_s12, %s438_s13  ;;  %p444_p3 = scmp.lt.s32.totalorder %s438_s13, %s438_s13 }
  0x2a   :  { %303 = vmatpush3.msra.mxu0 %v75_v2  ;;  %338 = vmatpush3.msra.mxu1 %v168_v7  ;;  %v68_v15 = vld [vmem:[#allocation5 + $0x38] sm:$0xff]  ;;  %v163_v16 = vld [vmem:[#allocation7 + $0x48] sm:$0xff]  ;;  %v67_v17 = vld [vmem:[#allocation5 + $0x30] sm:$0xff] }
  0x2b   :  { %304 = vmatprep.subr.mxu0 %v469_v0  ;;  %339 = vmatprep.subr.mxu1 %v469_v0  ;;  %v162_v18 = vld [vmem:[#allocation7 + $0x40] sm:$0xff]  ;;  %v66_v19 = vld [vmem:[#allocation5 + $0x28] sm:$0xff]  ;;  %v161_v20 = vld [vmem:[#allocation7 + $0x38] sm:$0xff]  ;;  %p445_p4 = por %p444_p3, %p443_p2 }
  0x2c   :  { %305 = vmatpush3.msra.mxu0 %v74_v3  ;;  %340 = vmatpush3.msra.mxu1 %v167_v8  ;;  %v65_v21 = vld [vmem:[#allocation5 + $0x20] sm:$0xff]  ;;  %v160_v22 = vld [vmem:[#allocation7 + $0x30] sm:$0xff]  ;;  %v64_v23 = vld [vmem:[#allocation5 + $0x18] sm:$0xff] }
  0x2d   :  { %306 = vmatprep.subr.mxu0 %v469_v0  ;;  %341 = vmatprep.subr.mxu1 %v469_v0  ;;  %v159_v24 = vld [vmem:[#allocation7 + $0x28] sm:$0xff]  ;;  %v63_v25 = vld [vmem:[#allocation5 + $0x10] sm:$0xff]  ;;  %v158_v26 = vld [vmem:[#allocation7 + $0x20] sm:$0xff]  ;;  %p446_p5 = pnand %p445_p4, %p439_p1 }
  0x2e   :  { %307 = vmatpush3.msra.mxu0 %v73_v4  ;;  %342 = vmatpush3.msra.mxu1 %v166_v10  ;;  %v62_v27 = vld [vmem:[#allocation5 + $0x8] sm:$0xff]  ;;  %v157_v28 = vld [vmem:[#allocation7 + $0x18] sm:$0xff]  ;;  %v61_v29 = vld [vmem:[#allocation5] sm:$0xff] }
  0x2f   :  { %308 = vmatprep.subr.mxu0 %v469_v0  ;;  %343 = vmatprep.subr.mxu1 %v469_v0  ;;  %v60_v30 = vld [vmem:[#allocation2] sm:$0xff]  ;;  %v156_v31 = vld [vmem:[#allocation7 + $0x10] sm:$0xff]  ;;  %v155_v32 = vld [vmem:[#allocation7 + $0x8] sm:$0xff] }
  0x30   :  { %309 = vmatpush3.msra.mxu0 %v72_v6  ;;  %344 = vmatpush3.msra.mxu1 %v165_v12  ;;  %v154_v33 = vld [vmem:[#allocation7] sm:$0xff]  ;;  %v264_v34 = vld [vmem:[%s556_s2] ss:$0 sm:$0xff] }
  0x31   :  { %310 = vmatprep.subr.mxu0 %v469_v0  ;;  %345 = vmatprep.subr.mxu1 %v469_v0  ;;  %v265_v38 = vld [vmem:[%s558_s4] ss:$0 sm:$0xff] }
  0x32   :  { %311 = vmatpush3.msra.mxu0 %v71_v9  ;;  %346 = vmatpush3.msra.mxu1 %v164_v14 }
  0x33   :  { %312 = vmatprep.subr.mxu0 %v469_v0  ;;  %347 = vmatprep.subr.mxu1 %v469_v0 }
  0x34   :  { %313 = vmatpush3.msra.mxu0 %v70_v11  ;;  %348 = vmatpush3.msra.mxu1 %v163_v16 }
  0x35   :  { %314 = vmatprep.subr.mxu0 %v469_v0  ;;  %349 = vmatprep.subr.mxu1 %v469_v0 }
  0x36   :  { %315 = vmatpush3.msra.mxu0 %v69_v13  ;;  %350 = vmatpush3.msra.mxu1 %v162_v18 }
  0x37   :  { %316 = vmatprep.subr.mxu0 %v469_v0  ;;  %351 = vmatprep.subr.mxu1 %v469_v0 }
  0x38   :  { %317 = vmatpush3.msra.mxu0 %v68_v15  ;;  %352 = vmatpush3.msra.mxu1 %v161_v20 }
  0x39   :  { %318 = vmatprep.subr.mxu0 %v469_v0  ;;  %353 = vmatprep.subr.mxu1 %v469_v0 }
  0x3a   :  { %319 = vmatpush3.msra.mxu0 %v67_v17  ;;  %354 = vmatpush3.msra.mxu1 %v160_v22 }
  0x3b   :  { %320 = vmatprep.subr.mxu0 %v469_v0  ;;  %355 = vmatprep.subr.mxu1 %v469_v0 }
  0x3c   :  { %321 = vmatpush3.msra.mxu0 %v66_v19  ;;  %356 = vmatpush3.msra.mxu1 %v159_v24 }
  0x3d   :  { %322 = vmatprep.subr.mxu0 %v469_v0  ;;  %357 = vmatprep.subr.mxu1 %v469_v0 }
  0x3e   :  { %323 = vmatpush3.msra.mxu0 %v65_v21  ;;  %358 = vmatpush3.msra.mxu1 %v158_v26 }
  0x3f   :  { %324 = vmatprep.subr.mxu0 %v469_v0  ;;  %359 = vmatprep.subr.mxu1 %v469_v0 }
  0x40   :  { %325 = vmatpush3.msra.mxu0 %v64_v23  ;;  %360 = vmatpush3.msra.mxu1 %v157_v28 }
  0x41   :  { %326 = vmatprep.subr.mxu0 %v469_v0  ;;  %361 = vmatprep.subr.mxu1 %v469_v0 }
  0x42   :  { %327 = vmatpush3.msra.mxu0 %v63_v25  ;;  %362 = vmatpush3.msra.mxu1 %v156_v31 }
  0x43   :  { %328 = vmatprep.subr.mxu0 %v469_v0  ;;  %363 = vmatprep.subr.mxu1 %v469_v0 }
  0x44   :  { %329 = vmatpush3.msra.mxu0 %v62_v27  ;;  %364 = vmatpush3.msra.mxu1 %v155_v32 }
  0x45   :  { %330 = vmatprep.subr.mxu0 %v469_v0  ;;  %365 = vmatprep.subr.mxu1 %v469_v0 }
  0x46   :  { %331 = vmatpush3.msra.mxu0 %v61_v29  ;;  %366 = vmatpush3.msra.mxu1 %v154_v33 }
  0x47   :  { %333 = vmatmul.mubr.f32.vlgmr.msra.gmra.mxu0 %v60_v30 }
 0x107   :  { %v150_v35 = vpop.f32.mrf.mxu0 }
 0x108   :  { %v151_v36 = vadd.f32 %v264_v34, %v150_v35 }
 0x109   :  { %v334_v37 = vpop.f32.mrf.mxu0 }
 0x10a   :  { %368 = vmatmul.mubr.f32.vlgmr.msra.gmra.mxu1 %v151_v36 }
 0x1ca   :  { %v243_v39 = vpop.f32.mrf.mxu1 }
 0x1cb   :  { %v244_v40 = vadd.f32 %v265_v38, %v243_v39 }
 0x1cc   :  { %v369_v41 = vpop.f32.mrf.mxu1 }
 0x1cd   :  { %247 = vst [vmem:[#allocation8] sm:$0xff] %v244_v40 }
 0x1ce   :  { %449 = shalt.err (!%p446_p5)
}
 0x1cf   :  { %257 = dma.vmem_to_hbm [thread:$0]  %s255_s12, 128, %s559_s5, [#allocation4]  }
 0x1d0   :  { %462 = dma.done.wait [#allocation4], 128  }
 0x1d1   :  { %463 = vsyncadd [#allocation4], 4294967168 }
 0x1d2   :  { %261 = vsyncpa [#allocation3], 1 }
 0x1d3   :  { %262 = vsyncpa [#allocation6], 1 }
 0x1d4   :  { %263 = vsyncpa [#allocation4], 1 }

</bundles_post_ra>
